<compile_context>
chip_gen: v7x
topology: tpu7x:2x2x1
jax: 0.10.0
libtpu: 0.0.40
codegen_flags: <defaults>
</compile_context>

<pallas_src>
import jax
import jax.numpy as jnp
from jax.experimental import pallas as pl
from jax.experimental.pallas import tpu as pltpu


def _round_up(x, m):
    return ((x + m - 1) // m) * m


def _vmem_budget_and_limit():
    """Generation-aware (tile VMEM budget, vmem_limit_bytes)."""
    cap = 64 * 1024 * 1024  # conservative default (v7x-sized VMEM)
    try:
        info = pltpu.get_tpu_info()
        cap = int(getattr(info, "vmem_capacity_bytes", cap) or cap)
    except Exception:
        pass
    if cap >= 96 * 1024 * 1024:            # v5e / v6e: 128 MiB physical VMEM
        return 80 * 1024 * 1024, 100 * 1024 * 1024
    return 40 * 1024 * 1024, 48 * 1024 * 1024   # v7x: 64 MiB physical VMEM


def _chunk_rows(tT, tU, max_rows=1024):
    """Largest cT (divides tT, multiple of 8) with cT * tU <= max_rows."""
    cT = tT
    while cT > 8 and cT * tU > max_rows:
        cT //= 2
    return cT


def _choose_tiles(T, U, Dp, tO, in_bytes, mm_bytes, out_bytes, budget_bytes):
    """Pick (tT, tU): minimize padded output cells, then grid-step count."""
    T8 = _round_up(max(T, 1), 8)
    U8 = _round_up(max(U, 1), 8)
    best, best_key = None, None
    for tT in (256, 128, 64, 32, 16, 8):
        if tT > T8:
            continue
        for tU in (128, 64, 32, 16, 8):
            if tU > U8:
                continue
            cT = _chunk_rows(tT, tU)
            rows = cT * tU
            cost = (2 * tT * Dp * in_bytes          # src block (double buffered)
                    + 2 * tU * Dp * in_bytes        # tgt block
                    + 2 * Dp * tO * mm_bytes        # weight slab (rotates on O)
                    + 2 * tO * 4                    # bias slab (f32)
                    + 2 * tT * tU * tO * out_bytes  # output block
                    + rows * Dp * in_bytes          # joint chunk only
                    + (rows * Dp * mm_bytes if mm_bytes != in_bytes else 0)
                    + rows * tO * 4)                # f32 accumulator chunk only
            if cost > budget_bytes:
                continue
            Tp = _round_up(T, tT)
            Up = _round_up(U, tU)
            key = (Tp * Up, (Tp // tT) * (Up // tU))
            if best_key is None or key < best_key:
                best_key, best = key, (tT, tU)
    if best is None:
        best = (8, 8)
    return best


def _make_joiner_kernel(c_t, mm_dtype):
    def kernel(src_ref, tgt_ref, w_ref, b_ref, out_ref):
        # src_ref: (1, tT, Dp)   tgt_ref: (1, tU, Dp)
        # w_ref:   (Dp, tO)      b_ref:   (1, tO) f32
        # out_ref: (1, tT, tU, tO)
        tT = src_ref.shape[1]
        tU = tgt_ref.shape[1]
        Dp = w_ref.shape[0]
        tO = w_ref.shape[1]

        tgt = tgt_ref[0]            # (tU, Dp) — loop invariant, loaded once
        w = w_ref[...]              # (Dp, tO)
        b = b_ref[...]              # (1, tO) f32

        n_chunks = tT // c_t

        @pl.loop(0, n_chunks)
        def _(c):
            r0 = pl.multiple_of(c * c_t, c_t)
            s = src_ref[0, pl.ds(r0, c_t), :]                # (c_t, Dp)
            # joint_encodings = source.unsqueeze(2) + target.unsqueeze(1)
            joint = s[:, None, :] + tgt[None, :, :]          # (c_t, tU, Dp)
            act = jnp.maximum(joint, 0).astype(mm_dtype)     # ReLU (+ bf16 cast)
            # tU is a multiple of 8 and Dp a multiple of 128, so this collapse
            # is a layout-preserving reshape.
            flat = act.reshape(c_t * tU, Dp)
            acc = jnp.dot(flat, w, preferred_element_type=jnp.float32)
            acc = acc + b                                    # bias in f32
            out_ref[0, pl.ds(r0, c_t), :, :] = (
                acc.reshape(c_t, tU, tO).astype(out_ref.dtype))

    return kernel


def joiner_forward(source_encodings, source_lengths, target_encodings,
                   target_lengths, weight, bias, *,
                   cast_f32_matmul_to_bf16=True):
    """source_encodings: (B, T, D), target_encodings: (B, U, D),
    weight: (O, D) (PyTorch nn.Linear layout), bias: (O,).
    Returns (output (B, T, U, O), source_lengths, target_lengths)."""
    B, T, D = source_encodings.shape
    _, U, _ = target_encodings.shape
    O = weight.shape[0]

    in_dtype = source_encodings.dtype
    out_dtype = in_dtype
    # MXU runs bf16 far faster than f32 on all generations; accumulation stays
    # f32 (numerics trade-off: logits via bf16 operands, usually fine for RNN-T).
    if cast_f32_matmul_to_bf16 and in_dtype == jnp.float32:
        mm_dtype = jnp.bfloat16
    else:
        mm_dtype = in_dtype

    in_bytes = jnp.dtype(in_dtype).itemsize
    mm_bytes = jnp.dtype(mm_dtype).itemsize
    out_bytes = jnp.dtype(out_dtype).itemsize

    Dp = _round_up(D, 128)                     # lane-dense contraction dim
    tO = min(512, _round_up(O, 128))           # O-tile bounds weight/output VMEM
    Op = _round_up(O, tO)

    budget, vmem_limit = _vmem_budget_and_limit()
    tT, tU = _choose_tiles(T, U, Dp, tO, in_bytes, mm_bytes, out_bytes, budget)
    cT = _chunk_rows(tT, tU)
    Tp = _round_up(T, tT)
    Up = _round_up(U, tU)

    # Pad only when needed (the final slice is also skipped when no padding).
    src = source_encodings
    if (Tp, Dp) != (T, D):
        src = jnp.pad(src, ((0, 0), (0, Tp - T), (0, Dp - D)))
    tgt = target_encodings
    if (Up, Dp) != (U, D):
        tgt = jnp.pad(tgt, ((0, 0), (0, Up - U), (0, Dp - D)))
    w_t = weight.T.astype(mm_dtype)
    if (Dp, Op) != (D, O):
        w_t = jnp.pad(w_t, ((0, Dp - D), (0, Op - O)))
    b2d = bias.astype(jnp.float32)
    if Op != O:
        b2d = jnp.pad(b2d, (0, Op - O))
    b2d = b2d.reshape(1, Op)

    # T-tile axis first (v7x megacore), O axis innermost (weight rotates while
    # src/tgt stay resident; src — usually the larger operand — is also
    # resident across the U-tile axis).
    grid = (Tp // tT, B, Up // tU, Op // tO)

    out = pl.pallas_call(
        _make_joiner_kernel(cT, mm_dtype),
        out_shape=jax.ShapeDtypeStruct((B, Tp, Up, Op), out_dtype),
        grid_spec=pltpu.PrefetchScalarGridSpec(
            num_scalar_prefetch=0,
            grid=grid,
            in_specs=[
                pl.BlockSpec((1, tT, Dp), lambda ti, bb, ui, oi: (bb, ti, 0)),
                pl.BlockSpec((1, tU, Dp), lambda ti, bb, ui, oi: (bb, ui, 0)),
                pl.BlockSpec((Dp, tO), lambda ti, bb, ui, oi: (0, oi)),
                pl.BlockSpec((1, tO), lambda ti, bb, ui, oi: (0, oi)),
            ],
            out_specs=pl.BlockSpec((1, tT, tU, tO),
                                   lambda ti, bb, ui, oi: (bb, ti, ui, oi)),
        ),
        compiler_params=pltpu.CompilerParams(
            dimension_semantics=("parallel", "parallel", "parallel", "parallel"),
            vmem_limit_bytes=vmem_limit,
        ),
        cost_estimate=pl.CostEstimate(
            flops=2 * B * Tp * Up * Dp * Op,
            transcendentals=0,
            bytes_accessed=(src.size * in_bytes + tgt.size * in_bytes
                            + B * (Tp // tT) * (Up // tU) * w_t.size * mm_bytes
                            + b2d.size * 4
                            + B * Tp * Up * Op * out_bytes),
        ),
    )(src, tgt, w_t, b2d)

    if (Tp, Up, Op) != (T, U, O):
        out = out[:, :T, :U, :O]
    # Lengths are pass-throughs (padded positions are NOT masked, matching
    # torchaudio's Joiner).
    return out, source_lengths, target_lengths


if __name__ == "__main__":
    # Small shapes consistent with the module:
    # B=2, T=8, U=8, input_dim D=32, output_dim O=16
    B, T, U, D, O = 2, 8, 8, 32, 16

    key = jax.random.PRNGKey(0)
    k_src, k_tgt, k_w, k_b = jax.random.split(key, 4)

    source_encodings = jax.random.normal(k_src, (B, T, D), dtype=jnp.float32)
    target_encodings = jax.random.normal(k_tgt, (B, U, D), dtype=jnp.float32)
    source_lengths = jnp.array([T, T - 2], dtype=jnp.int32)
    target_lengths = jnp.array([U, U - 3], dtype=jnp.int32)

    # Deterministic parameter init (synthetic, matches nn.Linear(D, O) shapes).
    weight = jax.random.normal(k_w, (O, D), dtype=jnp.float32) * 0.1
    bias = jax.random.normal(k_b, (O,), dtype=jnp.float32) * 0.1

    out, src_len_out, tgt_len_out = joiner_forward(
        source_encodings, source_lengths, target_encodings, target_lengths,
        weight, bias)
    out = jax.block_until_ready(out)

    # Reference check in plain JAX (f32). The kernel uses bf16 MXU operands
    # with f32 accumulation, so tolerance is looser than a pure-f32 match.
    joint = source_encodings[:, :, None, :] + target_encodings[:, None, :, :]
    act = jnp.maximum(joint, 0.0)
    ref = jnp.einsum("btud,od->btuo", act, weight) + bias
    assert out.shape == (B, T, U, O)
    assert jnp.allclose(out, ref, atol=1e-2, rtol=1e-2)
    assert jnp.array_equal(src_len_out, source_lengths)
    assert jnp.array_equal(tgt_len_out, target_lengths)

    print("KERNEL_OK")
</pallas_src>

<mosaic_0001>
module attributes {stable_mosaic.version = 11 : i64} {
  func.func @kernel(%arg0: i32, %arg1: i32, %arg2: i32, %arg3: i32, %arg4: memref<1x8x128xf32, #tpu.memory_space<vmem>>, %arg5: memref<1x8x128xf32, #tpu.memory_space<vmem>>, %arg6: memref<128x128xbf16, #tpu.memory_space<vmem>>, %arg7: memref<1x128xf32, #tpu.memory_space<vmem>>, %arg8: memref<1x8x8x128xf32, #tpu.memory_space<vmem>>) attributes {dimension_semantics = [#tpu.dimension_semantics<parallel>, #tpu.dimension_semantics<parallel>, #tpu.dimension_semantics<parallel>, #tpu.dimension_semantics<parallel>], iteration_bounds = array<i64: 1, 2, 1, 1>, scalar_prefetch = 0 : i64, scratch_operands = 0 : i64, tpu.core_type = #tpu.core_type<tc>, window_params = [{transform_indices = @transform_0, window_bounds = array<i64: 1, 8, 128>}, {transform_indices = @transform_1, window_bounds = array<i64: 1, 8, 128>}, {transform_indices = @transform_2, window_bounds = array<i64: 128, 128>}, {transform_indices = @transform_3, window_bounds = array<i64: 1, 128>}, {transform_indices = @transform_4, window_bounds = array<i64: 1, 8, 8, 128>}]} {
    %c0 = arith.constant 0 : index
    %c0_0 = arith.constant 0 : index
    %c0_1 = arith.constant 0 : index
    %0 = vector.load %arg5[%c0, %c0_0, %c0_1] : memref<1x8x128xf32, #tpu.memory_space<vmem>>, vector<1x8x128xf32>
    %1 = vector.shape_cast %0 : vector<1x8x128xf32> to vector<8x128xf32>
    %c0_2 = arith.constant 0 : index
    %c0_3 = arith.constant 0 : index
    %2 = vector.load %arg6[%c0_2, %c0_3] : memref<128x128xbf16, #tpu.memory_space<vmem>>, vector<128x128xbf16>
    %c0_4 = arith.constant 0 : index
    %c0_5 = arith.constant 0 : index
    %3 = vector.load %arg7[%c0_4, %c0_5] : memref<1x128xf32, #tpu.memory_space<vmem>>, vector<1x128xf32>
    %c0_i32 = arith.constant 0 : i32
    %c1_i32 = arith.constant 1 : i32
    %4 = arith.muli %c0_i32, %c1_i32 : i32
    %c0_i32_6 = arith.constant 0 : i32
    %5 = arith.addi %c0_i32_6, %4 : i32
    %c8_i32 = arith.constant 8 : i32
    %6 = arith.muli %5, %c8_i32 : i32
    %7 = tpu.assume_multiple %6, 8 : i32
    %c0_7 = arith.constant 0 : index
    %8 = arith.index_cast %7 : i32 to index
    %c0_8 = arith.constant 0 : index
    %9 = vector.load %arg4[%c0_7, %8, %c0_8] : memref<1x8x128xf32, #tpu.memory_space<vmem>>, vector<1x8x128xf32>
    %10 = vector.shape_cast %9 : vector<1x8x128xf32> to vector<8x128xf32>
    %11 = vector.shape_cast %10 : vector<8x128xf32> to vector<8x1x128xf32>
    %12 = vector.shape_cast %1 : vector<8x128xf32> to vector<1x8x128xf32>
    %13 = vector.broadcast %11 : vector<8x1x128xf32> to vector<8x8x128xf32>
    %14 = vector.broadcast %12 : vector<1x8x128xf32> to vector<8x8x128xf32>
    %15 = arith.addf %13, %14 : vector<8x8x128xf32>
    %cst = arith.constant 0.000000e+00 : f32
    %16 = vector.broadcast %cst : f32 to vector<8x8x128xf32>
    %17 = arith.maximumf %15, %16 : vector<8x8x128xf32>
    %18 = arith.truncf %17 : vector<8x8x128xf32> to vector<8x8x128xbf16>
    %19 = vector.shape_cast %18 : vector<8x8x128xbf16> to vector<64x128xbf16>
    %cst_9 = arith.constant dense<0.000000e+00> : vector<64x128xf32>
    %20 = tpu.matmul %19, %2, %cst_9 {dimension_numbers = #tpu.dot_dimension_numbers<[1], [0], [0], [1], [0, 0, 1, 1], [], []>} : vector<64x128xbf16>, vector<128x128xbf16>, vector<64x128xf32> -> vector<64x128xf32>
    %21 = vector.broadcast %3 : vector<1x128xf32> to vector<64x128xf32>
    %22 = arith.addf %20, %21 : vector<64x128xf32>
    %23 = vector.shape_cast %22 : vector<64x128xf32> to vector<8x8x128xf32>
    %c0_10 = arith.constant 0 : index
    %24 = arith.index_cast %7 : i32 to index
    %c0_11 = arith.constant 0 : index
    %c0_12 = arith.constant 0 : index
    %25 = vector.load %arg8[%c0_10, %24, %c0_11, %c0_12] : memref<1x8x8x128xf32, #tpu.memory_space<vmem>>, vector<1x8x8x128xf32>
    %26 = vector.shape_cast %25 : vector<1x8x8x128xf32> to vector<8x8x128xf32>
    %27 = vector.shape_cast %23 : vector<8x8x128xf32> to vector<1x8x8x128xf32>
    tpu.vector_store %arg8[%c0_10, %24, %c0_11, %c0_12], %27 {strides = array<i32>} : memref<1x8x8x128xf32, #tpu.memory_space<vmem>>, vector<1x8x8x128xf32>,
    %c1_i32_13 = arith.constant 1 : i32
    return
  }
  func.func @transform_0(%arg0: i32, %arg1: i32, %arg2: i32, %arg3: i32) -> (i32, i32, i32) {
    %c0_i32 = arith.constant 0 : i32
    %c0_i32_0 = arith.constant 0 : i32
    return %arg1, %arg0, %c0_i32 : i32, i32, i32
  }
  func.func @transform_1(%arg0: i32, %arg1: i32, %arg2: i32, %arg3: i32) -> (i32, i32, i32) {
    %c0_i32 = arith.constant 0 : i32
    %c0_i32_0 = arith.constant 0 : i32
    return %arg1, %arg2, %c0_i32 : i32, i32, i32
  }
  func.func @transform_2(%arg0: i32, %arg1: i32, %arg2: i32, %arg3: i32) -> (i32, i32) {
    %c0_i32 = arith.constant 0 : i32
    %c0_i32_0 = arith.constant 0 : i32
    return %c0_i32, %arg3 : i32, i32
  }
  func.func @transform_3(%arg0: i32, %arg1: i32, %arg2: i32, %arg3: i32) -> (i32, i32) {
    %c0_i32 = arith.constant 0 : i32
    %c0_i32_0 = arith.constant 0 : i32
    return %c0_i32, %arg3 : i32, i32
  }
  func.func @transform_4(%arg0: i32, %arg1: i32, %arg2: i32, %arg3: i32) -> (i32, i32, i32, i32) {
    %c0_i32 = arith.constant 0 : i32
    return %arg1, %arg0, %arg2, %arg3 : i32, i32, i32, i32
  }
}

</mosaic_0001>

<bundles_post_ra>
// kernel: tpu_custom_call.1
= control target key start
LH: loop header
LB: loop body
LE: loop exit
PB: predicated region body
PF: predicated region fallthrough
CT: control target
= control target key end

     0   :  { %s1420_s0 = inlined_call_operand.hbm [shape: f32[2,8,128], index: 0, kind: input, shape index: {}]   ;;  %s1421_s1 = inlined_call_operand.hbm [shape: f32[2,8,128], index: 1, kind: input, shape index: {}]   ;;  %s1422_s2 = inlined_call_operand.hbm [shape: bf16[128,128], index: 2, kind: input, shape index: {}]   ;;  %s1423_s3 = inlined_call_operand.vmem [shape: f32[1,128], index: 3, kind: input, shape index: {}]   ;;  %s1424_s4 = inlined_call_operand.hbm [shape: f32[2,8,8,128], index: 4, kind: output, shape index: {}]  }
   0x1   :  { %1431 = sst [smem:[#allocation15_spill]] %s1422_s2 }
   0x2   :  { %9 = vsyncpa [#allocation3], 0 }
   0x3   :  { %11 = vsyncpa [#allocation3 + $0x1], 0 }
   0x4   :  { %12 = vsyncpa [#allocation6], 0 }
   0x5   :  { %14 = vsyncpa [#allocation6 + $0x1], 0 }
   0x6   :  { %15 = vsyncpa [#allocation4], 0 }
   0x7   :  { %17 = vsyncpa [#allocation4 + $0x1], 0  ;;  %s1165_s15 = smov 0   ;;  %s1167_s16 = smov 0  }
   0x8   :  { %s1169_s17 = smov 0   ;;  %s1171_s18 = smov 0  }
   0x9   :  { %s1173_s19 = smov 0   ;;  %s1175_s20 = smov 0  }
   0xa LB: > { %1432 = sst [smem:[#allocation13_spill]] %s1125_s19  ;;  %s1196_s21 = sadd.s32 4294967295, %s1129_s20   ;;  %s1129_s20 = sphi %s1175_s20, %s23_s20   ;;  %s1125_s19 = sphi %s1173_s19, %s1451_s19   ;;  %s1121_s18 = sphi %s1171_s18, %s1450_s18   ;;  %s1117_s17 = sphi %s1169_s17, %s1454_s17   ;;  %s1113_s16 = sphi %s1167_s16, %s1453_s16   ;;  %s1109_s15 = sphi %s1165_s15, %s1452_s15  }
   0xb   : > { %s770_s22 = sadd.s32 4294967294, %s1129_s20   ;;  %p71_p0 = scmp.ne.s32.totalorder %s1113_s16, %s1109_s15 }
   0xc   : > { %p1425_p1 = scmp.eq.s32.totalorder %s1196_s21, 0  ;;  %p187_p3 = scmp.eq.s32.totalorder %s770_s22, 1 }
   0xd   : > { %p771_p5 = scmp.ge.s32.totalorder %s1129_s20, 1  ;;  %p194_p7 = scmp.lt.s32.totalorder %s1129_s20, 3 }
   0xe   : > { %p1205_p4 = por %p1425_p1, %p71_p0  ;;  %p1210_p6 = por %p187_p3, %p71_p0 }
   0xf   : > { %p1215_p8 = pnand %p771_p5, %p194_p7  ;;  %s1131_s26 = smov [#allocation7]  }
  0x10   : > { %s1433_s23 = scalar_select %p1205_p4, 1, 0 }
  0x11   : > { %s1434_s24 = scalar_select %p1210_p6, 1, 0 }
  0x12   : > { %s1435_s25 = scalar_select %p1215_p8, 1, 0 }
  0x13   : > { %s208_s27 = sshll.u32 %s1131_s26, 4  ;;  %p869_p9 = pneg %p1215_p8  ;;  %s209_s27 = int_to_ptr.vmem [resolvable:$true] %s208_s27 }
  0x14   : > { %s45_s29 = sadd.s32 1, %s1125_s19  ;;  %s1437_s2 = sld [smem:[#allocation15_spill]] }
  0x15   : > { %p1224_p11 = pnand %p869_p9, %p1425_p1 }
  0x17   : > { %p953_p13 = pneg %p1224_p11 }
  0x1a   : > { %s951_s6 = scalar_lea.hbm %s1437_s2, 1024 }
  0x1b   : > { %p952_p12 = scmp.ne.s32.totalorder %s1437_s2, %s951_s6  ;;  %p958_p5 = scmp.lt.u32.totalorder %s951_s6, %s1437_s2 }
  0x1d   : > { %p954_p0 = pnand %p953_p13, %p952_p12 }
  0x1f   : > { %p955_p3 = pneg %p954_p0 }
  0x21   : > { %p960_p7 = pnand %p958_p5, %p955_p3 }
  0x23   : > { %963 = shalt.err (!%p960_p7)
}
  0x24   : > { %s964_s11 = scalar_lea.vmem %s209_s27, 1024  ;;  %p972_p2 = scmp.lt.s32.totalorder %s209_s27, %s209_s27 }
  0x25   : > { %p965_p9 = scmp.ne.s32.totalorder %s209_s27, %s964_s11  ;;  %p973_p6 = scmp.lt.s32.totalorder %s964_s11, %s964_s11 }
  0x27   : > { %p967_p10 = pnand %p965_p9, %p953_p13  ;;  %p974_p4 = por %p973_p6, %p972_p2 }
  0x29   : > { %p968_p1 = pneg %p967_p10 }
  0x2b   : > { %p975_p8 = pnand %p974_p4, %p968_p1 }
  0x2d   : > { %978 = shalt.err (!%p975_p8)
}
  0x2e   : > { %s1132_s12 = smov 64   ;;  %s1133_s13 = smov 4  }
  0x2f   : > { %872 = dma.hbm_to_vmem [thread:$0]  (!%p1224_p11), %s1437_s2, 1024, %s209_s27, [#allocation6], %s1132_s12, %s1132_s12, %s1133_s13  }
  0x30   : > { %p47_p1 = scmp.ge.s32.totalorder %s45_s29, 2  ;;  %s58_s26 = sadd.s32 1, %s1117_s17 }
  0x31   : > { %p65_p2 = scmp.ne.s32.totalorder %s1117_s17, %s1113_s16  ;;  %p66_p4 = scmp.eq.s32.totalorder %s1129_s20, 0 }
  0x32   : > { %s1456_s29 = smov (%p47_p1, %s45_s29), 0  ;;  %p1440_p8 = scmp.eq.s32.totalorder %s1196_s21, 1 }
  0x33   : > { %1438 = sst [smem:[#allocation14_spill]] %s1456_s29  ;;  %p1251_p6 = por %p66_p4, %p65_p2 }
  0x34   : > { %p1257_p10 = por %p1440_p8, %p65_p2  ;;  %s53_s5 = ssub.s32 %s1125_s19, %s1456_s29 }
  0x35   : > { %p885_p11 = scmp.lt.s32.totalorder %s1129_s20, 2  ;;  %p56_p12 = scmp.eq.s32.totalorder %s53_s5, 0 }
  0x36   : > { %s1441_s28 = scalar_select %p1257_p10, 1, 0 }
  0x37   : > { %s228_s27 = sand.u32 1, %s1117_s17   ;;  %s776_s8 = sshll.u32 %s1125_s19, 7 }
  0x38   : > { %s1265_s6 = sshll.u32 %s228_s27, 3  ;;  %s1274_s11 = scalar_lea.hbm %s1420_s0, %s776_s8 }
  0x39   : > { %s1268_s7 = scalar_select %p56_p12, %s1117_s17, %s58_s26  }
  0x3a   : > { %s232_s12 = scalar_lea.vmem [#allocation2], %s1265_s6  ;;  %p1281_p13 = pnand %p885_p11, %p1251_p6 }
  0x3b   : > { %s240_s13 = sshll.u32 %s232_s12, 4  ;;  %s1288_s5 = scalar_lea.hbm %s1421_s1, %s776_s8  ;;  %s1277_s13 = int_to_ptr.vmem [resolvable:$true] %s240_s13 }
  0x3c   : > { %s247_s9 = sand.u32 1, %s1129_s20   ;;  %s229_s10 = scalar_lea.sflag [#allocation3], %s228_s27 }
  0x3d   : > { %s979_s2 = scalar_lea.hbm %s1274_s11, 128  ;;  %p981_p3 = pneg %p1281_p13 }
  0x3e   : > { %p980_p0 = scmp.ne.s32.totalorder %s1274_s11, %s979_s2  ;;  %s984_s29 = scalar_lea.hbm %s1420_s0, 256 }
  0x3f   : > { %p985_p9 = scmp.lt.u32.totalorder %s1274_s11, %s1420_s0  ;;  %p986_p1 = scmp.lt.u32.totalorder %s984_s29, %s979_s2 }
  0x40   : > { %p982_p5 = pnand %p981_p3, %p980_p0  ;;  %p988_p4 = scmp.lt.u32.totalorder %s979_s2, %s1274_s11 }
  0x41   : > { %p987_p2 = por %p986_p1, %p985_p9 }
  0x42   : > { %p983_p7 = pneg %p982_p5 }
  0x43   : > { %p989_p6 = por %p988_p4, %p987_p2 }
  0x45   : > { %p990_p8 = pnand %p989_p6, %p983_p7 }
  0x47   : > { %993 = shalt.err (!%p990_p8)
}
  0x48   : > { %s994_s27 = scalar_lea.vmem %s1277_s13, 128  ;;  %s1134_s8 = smov [#allocation2]  }
  0x49   : > { %p995_p11 = scmp.ne.s32.totalorder %s1277_s13, %s994_s27  ;;  %s999_s26 = sshll.u32 %s1134_s8, 4  ;;  %s1000_s26 = int_to_ptr.vmem [resolvable:$false] %s999_s26 }
  0x4a   : > { %s1001_s19 = scalar_lea.vmem %s1000_s26, 256  ;;  %p1002_p5 = scmp.lt.s32.totalorder %s1277_s13, %s1000_s26 }
  0x4b   : > { %p997_p12 = pnand %p995_p11, %p981_p3  ;;  %p1003_p9 = scmp.lt.s32.totalorder %s1001_s19, %s994_s27 }
  0x4d   : > { %p998_p0 = pneg %p997_p12  ;;  %p1004_p1 = por %p1003_p9, %p1002_p5 }
  0x4f   : > { %p1005_p2 = pnand %p1004_p1, %p998_p0 }
  0x51   : > { %1008 = shalt.err (!%p1005_p2)
}
  0x52   : > { %876 = dma.hbm_to_vmem [thread:$0]  (!%p1281_p13), %s1274_s11, 128, %s1277_s13, %s229_s10  }
  0x53   : > { %s251_s2 = scalar_lea.vmem [#allocation5], %s1265_s6  ;;  %s248_s30 = scalar_lea.sflag [#allocation6], %s247_s9 }
  0x54   : > { %s259_s29 = sshll.u32 %s251_s2, 4  ;;  %s1009_s12 = scalar_lea.hbm %s1288_s5, 128  ;;  %s260_s29 = int_to_ptr.vmem [resolvable:$true] %s259_s29 }
  0x55   : > { %p1010_p7 = scmp.ne.s32.totalorder %s1288_s5, %s1009_s12  ;;  %s1014_s8 = scalar_lea.hbm %s1421_s1, 256 }
  0x56   : > { %p1015_p8 = scmp.lt.u32.totalorder %s1288_s5, %s1421_s1  ;;  %p1016_p11 = scmp.lt.u32.totalorder %s1014_s8, %s1009_s12 }
  0x57   : > { %p1012_p4 = pnand %p1010_p7, %p981_p3  ;;  %p1018_p0 = scmp.lt.u32.totalorder %s1009_s12, %s1288_s5 }
  0x58   : > { %p1017_p12 = por %p1016_p11, %p1015_p8 }
  0x59   : > { %p1013_p6 = pneg %p1012_p4 }
  0x5a   : > { %p1019_p5 = por %p1018_p0, %p1017_p12 }
  0x5c   : > { %p1020_p9 = pnand %p1019_p5, %p1013_p6 }
  0x5e   : > { %1023 = shalt.err (!%p1020_p9)
}
  0x5f   : > { %s1024_s6 = scalar_lea.vmem %s260_s29, 128  ;;  %s1135_s11 = smov [#allocation5]  }
  0x60   : > { %p1025_p1 = scmp.ne.s32.totalorder %s260_s29, %s1024_s6  ;;  %s1029_s13 = sshll.u32 %s1135_s11, 4  ;;  %s1030_s13 = int_to_ptr.vmem [resolvable:$false] %s1029_s13 }
  0x61   : > { %s1031_s9 = scalar_lea.vmem %s1030_s13, 256  ;;  %p1032_p4 = scmp.lt.s32.totalorder %s260_s29, %s1030_s13 }
  0x62   : > { %p1027_p2 = pnand %p1025_p1, %p981_p3  ;;  %p1033_p10 = scmp.lt.s32.totalorder %s1031_s9, %s1024_s6 }
  0x64   : > { %p1028_p7 = pneg %p1027_p2  ;;  %p1034_p8 = por %p1033_p10, %p1032_p4 }
  0x66   : > { %p1035_p11 = pnand %p1034_p8, %p1028_p7 }
  0x68   : > { %1038 = shalt.err (!%p1035_p11)
}
  0x69   : > { %879 = dma.hbm_to_vmem [thread:$0]  (!%p1281_p13), %s1288_s5, 128, %s260_s29, %s248_s30  }
  0x6a   : > { %p1443_p6 = scmp.ne.s32.totalorder %s1435_s25, 0 }
  0x6b   : > { %s1341_s10 = sand.u32 (!%p1443_p6), 1, %s1113_s16   ;;  %p1444_p3 = scmp.ne.s32.totalorder (!%p1443_p6), %s1433_s23, 0 }
  0x6c   : > { %268 = sbr.rel (%p1443_p6) target bundleno = 387 (0x183), region = 36  ;;  %s780_s2 = sshll.u32 (!%p1443_p6), %s1341_s10, 3 }
  0x6d   : > { %s271_s12 = scalar_lea.sflag (!%p1443_p6), [#allocation3], %s1341_s10  ;;  %s274_s22 = scalar_lea.vmem (!%p1443_p6), [#allocation2], %s780_s2 }
  0x73   : > { %1092 = dma.done.wait (%p1444_p3), %s271_s12, 128  }
  0x74   : > { %1094 = vsyncadd (%p1444_p3), %s271_s12, 4294967168  ;;  %s279_s14 = sand.u32 1, %s1196_s21   ;;  %s1350_s25 = scalar_lea.vmem [#allocation5], %s780_s2 }
  0x75   : > { %s280_s5 = scalar_lea.sflag [#allocation6], %s279_s14 }
  0x76   : > { %1096 = dma.done.wait (%p1444_p3), %s280_s5, 128  }
  0x77   : > { %1098 = vsyncadd (%p1444_p3), %s280_s5, 4294967168  ;;  %p1445_p10 = scmp.eq.s32.totalorder %s1196_s21, 0 }
  0x79   : > { %1100 = dma.done.wait (%p1445_p10), [#allocation6], 1024   ;;  %p1446_p13 = pmov %p1445_p10 }
  0x7a   : > { %v1136_v0 = vmov 1966171168   ;;  %v349_v2 = vlaneseq  ;;  %v942_v3 = vld [vmem:[#allocation7] sm:$0xff]   ;;  %v943_v4 = vld [vmem:[#allocation7 + $0x8] sm:$0xff]   ;;  %v944_v7 = vld [vmem:[#allocation7 + $0x10] sm:$0xff]   ;;  %s783_s21 = sshll.u32 %s1341_s10, 6 }
  0x7b   : > { %1102 = vsyncadd (%p1446_p13), [#allocation6], 4294966272  ;;  %v347_v1 = vunpack.c.l.s4 %v1136_v0  ;;  %819 = vmatprep.subr.bf16.mxu0 %v942_v3  ;;  %843 = vmatprep.subr.bf16.mxu1 %v942_v3  ;;  %v945_v9 = vld [vmem:[#allocation7 + $0x18] sm:$0xff]   ;;  %v343_v10 = vld [vmem:[%s274_s22] sm:$0xff]  ;;  %s319_s30 = scalar_lea.vmem [#allocation8], %s783_s21  ;;  %s806_s8 = sshll.u32 %s1121_s18, 10 }
  0x7c   : > { %v350_v6 = vshrl.u32 %v349_v2, 7  ;;  %820 = vmatpush3.bf16.msra.mxu0 %v942_v3  ;;  %851 = vmatpush3.bf16.msra.mxu1 %v942_v3  ;;  %v345_v13 = vcombine.high %v343_v10, %v343_v10  ;;  %v946_v17 = vld [vmem:[#allocation7 + $0x20] sm:$0xff]   ;;  %v325_v18 = vld [vmem:[%s1350_s25] sm:$0xff]  ;;  %v947_v27 = vld [vmem:[#allocation7 + $0x28] sm:$0xff]   ;;  %s629_s27 = sshll.u32 %s319_s30, 4  ;;  %s1371_s19 = scalar_lea.hbm %s1424_s4, %s806_s8  ;;  %s1366_s27 = int_to_ptr.vmem [resolvable:$true] %s629_s27 }
  0x7d   : > { %v348_v5 = vunpack.c.0.s8 %v347_v1  ;;  %821 = vmatprep.subr.bf16.mxu0 %v943_v4  ;;  %844 = vmatprep.subr.bf16.mxu1 %v943_v4  ;;  %v948_v40 = vld [vmem:[#allocation7 + $0x30] sm:$0xff]   ;;  %v949_v50 = vld [vmem:[#allocation7 + $0x38] sm:$0xff]   ;;  %v784_v58 = vld [vmem:[%s1423_s3] ss:$0 sm:$0xff]  ;;  %s612_s6 = scalar_lea.sflag [#allocation4], %s1341_s10  ;;  %s1039_s11 = scalar_lea.vmem %s1366_s27, 1024 }
  0x7e   : > { %v396_v12 = vsub.s32 0, %v350_v6  ;;  %p1040_p12 = scmp.ne.s32.totalorder %s1366_s27, %s1039_s11  ;;  %p1447_p0 = scmp.ne.s32.totalorder %s1441_s28, 0 }
  0x7f   : > { %v351_v8 = vsub.s32 %v348_v5, %v350_v6  ;;  %s1137_s13 = smov [#allocation8]  }
  0x80   : > { %822 = vmatpush3.bf16.msra.mxu0 %v943_v4  ;;  %852 = vmatpush3.bf16.msra.mxu1 %v943_v4  ;;  %p1041_p5 = pnand %p1040_p12, %p1447_p0  ;;  %s1043_s9 = sshll.u32 %s1137_s13, 4  ;;  %s1044_s9 = int_to_ptr.vmem [resolvable:$false] %s1043_s9 }
  0x81   : > { %823 = vmatprep.subr.bf16.mxu0 %v944_v7  ;;  %845 = vmatprep.subr.bf16.mxu1 %v944_v7  ;;  %v352_v11 = vrot.slane %v343_v10, %v351_v8  ;;  %v359_v16 = vrot.slane %v345_v13, %v351_v8  ;;  %s1045_s2 = scalar_lea.vmem %s1044_s9, 2048  ;;  %p1046_p1 = scmp.lt.s32.totalorder %s1366_s27, %s1044_s9 }
  0x82   : > { %p1042_p9 = pneg %p1041_p5  ;;  %p1047_p2 = scmp.lt.s32.totalorder %s1045_s2, %s1039_s11 }
  0x83   : > { %v360_v14 = vcombine.high %v352_v11, %v352_v11  ;;  %v368_v15 = vrot.slane %v352_v11, %v351_v8  ;;  %v361_v22 = vcombine.high %v359_v16, %v359_v16  ;;  %v375_v23 = vrot.slane %v359_v16, %v351_v8 }
  0x84   : > { %824 = vmatpush3.bf16.msra.mxu0 %v944_v7  ;;  %853 = vmatpush3.bf16.msra.mxu1 %v944_v7  ;;  %p1048_p7 = por %p1047_p2, %p1046_p1 }
  0x85   : > { %825 = vmatprep.subr.bf16.mxu0 %v945_v9  ;;  %846 = vmatprep.subr.bf16.mxu1 %v945_v9  ;;  %v382_v19 = vrot.slane %v360_v14, %v351_v8  ;;  %v390_v20 = vcombine.high %v368_v15, %v368_v15  ;;  %v397_v21 = vrot.slane %v368_v15, %v396_v12 }
  0x86   : > { %v389_v28 = vrot.slane %v361_v22, %v351_v8  ;;  %v391_v29 = vcombine.high %v375_v23, %v375_v23  ;;  %v413_v30 = vrot.slane %v375_v23, %v396_v12  ;;  %p1049_p4 = pnand %p1048_p7, %p1042_p9 }
  0x87   : > { %v392_v24 = vcombine.high %v382_v19, %v382_v19  ;;  %v401_v25 = vrot.slane %v382_v19, %v396_v12  ;;  %v434_v26 = vadd.f32 %v397_v21, %v325_v18  ;;  %v405_v33 = vrot.slane %v390_v20, %v396_v12 }
  0x88   : > { %826 = vmatpush3.bf16.msra.mxu0 %v945_v9  ;;  %854 = vmatpush3.bf16.msra.mxu1 %v945_v9  ;;  %v393_v35 = vcombine.high %v389_v28, %v389_v28  ;;  %v417_v36 = vrot.slane %v389_v28, %v396_v12  ;;  %v438_v37 = vadd.f32 %v413_v30, %v325_v18 }
  0x89   : > { %827 = vmatprep.subr.bf16.mxu0 %v946_v17  ;;  %847 = vmatprep.subr.bf16.mxu1 %v946_v17  ;;  %v435_v31 = vadd.f32 %v401_v25, %v325_v18  ;;  %v442_v32 = vmax.f32 %v434_v26, 0.0  ;;  %v409_v34 = vrot.slane %v392_v24, %v396_v12  ;;  %v421_v38 = vrot.slane %v391_v29, %v396_v12 }
  0x8a   : > { %v439_v41 = vadd.f32 %v417_v36, %v325_v18  ;;  %v446_v42 = vmax.f32 %v438_v37, 0.0  ;;  %v425_v43 = vrot.slane %v393_v35, %v396_v12  ;;  %v436_v45 = vadd.f32 %v405_v33, %v325_v18 }
  0x8b   : > { %v443_v39 = vmax.f32 %v435_v31, 0.0  ;;  %v437_v47 = vadd.f32 %v409_v34, %v325_v18  ;;  %v440_v48 = vadd.f32 %v421_v38, %v325_v18 }
  0x8c   : > { %828 = vmatpush3.bf16.msra.mxu0 %v946_v17  ;;  %855 = vmatpush3.bf16.msra.mxu1 %v946_v17  ;;  %v447_v46 = vmax.f32 %v439_v41, 0.0  ;;  %v441_v49 = vadd.f32 %v425_v43, %v325_v18  ;;  %v444_v52 = vmax.f32 %v436_v45, 0.0 }
  0x8d   : > { %829 = vmatprep.subr.bf16.mxu0 %v947_v27  ;;  %848 = vmatprep.subr.bf16.mxu1 %v947_v27  ;;  %v802_v44 = vpack.c.bf16 %v443_v39, %v442_v32  ;;  %v445_v53 = vmax.f32 %v437_v47, 0.0  ;;  %v448_v54 = vmax.f32 %v440_v48, 0.0 }
  0x8e   : > { %v804_v51 = vpack.c.bf16 %v447_v46, %v446_v42  ;;  %v449_v55 = vmax.f32 %v441_v49, 0.0 }
  0x8f   : > { %835 = vmatprep.mubr.bf16.mxu0 %v802_v44  ;;  %v803_v56 = vpack.c.bf16 %v445_v53, %v444_v52 }
  0x90   : > { %830 = vmatpush3.bf16.msra.mxu0 %v947_v27  ;;  %856 = vmatpush3.bf16.msra.mxu1 %v947_v27  ;;  %v805_v57 = vpack.c.bf16 %v449_v55, %v448_v54 }
  0x91   : > { %831 = vmatprep.subr.bf16.mxu0 %v948_v40  ;;  %849 = vmatprep.subr.bf16.mxu1 %v948_v40 }
  0x92   : > { %839 = vmatprep.mubr.bf16.mxu1 %v804_v51 }
  0x94   : > { %832 = vmatpush3.bf16.msra.mxu0 %v948_v40  ;;  %857 = vmatpush3.bf16.msra.mxu1 %v948_v40 }
  0x95   : > { %833 = vmatprep.subr.bf16.mxu0 %v949_v50  ;;  %850 = vmatprep.subr.bf16.mxu1 %v949_v50 }
  0x98   : > { %834 = vmatpush3.bf16.msra.mxu0 %v949_v50  ;;  %858 = vmatpush3.bf16.msra.mxu1 %v949_v50 }
  0x9b   : > { %836 = vmatmul.mubr.bf16.vlgmr.msra.gmra.mrb[0].mxu0 %v803_v56  ;;  %840 = vmatmul.mubr.bf16.vlgmr.msra.gmra.mrb[0].mxu1 %v805_v57 }
 0x16e   : > { %v837_v59 = vpop.f32.mrb[0].mxu0  ;;  %v841_v60 = vpop.f32.mrb[0].mxu1 }
 0x16f   : > { %v579_v61 = vadd.f32 %v837_v59, %v784_v58  ;;  %v595_v62 = vadd.f32 %v841_v60, %v784_v58  ;;  %v570_v63 = vpop.f32.mrb[1].mxu0  ;;  %v586_v0 = vpop.f32.mrb[1].mxu1 }
 0x170   : > { %v571_v1 = vadd.f32 %v784_v58, %v570_v63  ;;  %v587_v2 = vadd.f32 %v784_v58, %v586_v0  ;;  %v838_v3 = vpop.f32.mrb[2].mxu0  ;;  %v842_v4 = vpop.f32.mrb[2].mxu1 }
 0x171   : > { %605 = vst [vmem:[%s319_s30 + $0x10] sm:$0xff] %v579_v61  ;;  %609 = vst [vmem:[%s319_s30 + $0x30] sm:$0xff] %v595_v62  ;;  %v582_v5 = vadd.f32 %v838_v3, %v784_v58  ;;  %v598_v6 = vadd.f32 %v842_v4, %v784_v58  ;;  %v573_v7 = vpop.f32.mrb[3].mxu0  ;;  %v589_v8 = vpop.f32.mrb[3].mxu1 }
 0x172   : > { %603 = vst [vmem:[%s319_s30] sm:$0xff] %v571_v1  ;;  %607 = vst [vmem:[%s319_s30 + $0x20] sm:$0xff] %v587_v2  ;;  %v574_v9 = vadd.f32 %v784_v58, %v573_v7  ;;  %v590_v10 = vadd.f32 %v784_v58, %v589_v8 }
 0x173   : > { %606 = vst [vmem:[%s319_s30 + $0x18] sm:$0xff] %v582_v5  ;;  %610 = vst [vmem:[%s319_s30 + $0x38] sm:$0xff] %v598_v6 }
 0x174   : > { %604 = vst [vmem:[%s319_s30 + $0x8] sm:$0xff] %v574_v9  ;;  %608 = vst [vmem:[%s319_s30 + $0x28] sm:$0xff] %v590_v10 }
 0x175   : > { %1052 = shalt.err (!%p1049_p4)
}
 0x176   : > { %s1053_s12 = scalar_lea.hbm %s1371_s19, 1024  ;;  %s1057_s5 = scalar_lea.hbm %s1424_s4, 2048 }
 0x177   : > { %p1054_p8 = scmp.ne.s32.totalorder %s1371_s19, %s1053_s12  ;;  %p1058_p3 = scmp.lt.u32.totalorder %s1371_s19, %s1424_s4 }
 0x178   : > { %p1059_p10 = scmp.lt.u32.totalorder %s1057_s5, %s1053_s12  ;;  %p1061_p12 = scmp.lt.u32.totalorder %s1053_s12, %s1371_s19 }
 0x179   : > { %p1055_p11 = pnand %p1054_p8, %p1447_p0 }
 0x17a   : > { %p1060_p13 = por %p1059_p10, %p1058_p3 }
 0x17b   : > { %p1056_p6 = pneg %p1055_p11 }
 0x17c   : > { %p1062_p5 = por %p1061_p12, %p1060_p13 }
 0x17e   : > { %p1063_p9 = pnand %p1062_p5, %p1056_p6 }
 0x180   : > { %1066 = shalt.err (!%p1063_p9)
}
 0x181   : > { %s1138_s23 = smov 128   ;;  %s1139_s29 = smov 8  }
 0x182   : > { %867 = dma.vmem_to_hbm [thread:$0]  (%p1447_p0), %s1366_s27, 1024, %s1371_s19, %s612_s6, %s1138_s23, %s1138_s23, %s1139_s29  }
 0x183 PF: > { %s644_s30 = sand.u32 1, %s1109_s15   ;;  %p1448_p1 = scmp.ne.s32.totalorder %s1434_s24, 0 }
 0x184   : > { %p1449_p2 = scmp.ge.s32.totalorder %s1129_s20, 2  ;;  %s645_s8 = scalar_lea.sflag [#allocation4], %s644_s30 }
 0x186   : > { %p881_p7 = pnand %p1449_p2, %p1448_p1 }
 0x188   : > { %1104 = dma.done.wait (!%p881_p7), %s645_s8, 1024  }
 0x189   : > { %1106 = vsyncadd (!%p881_p7), %s645_s8, 4294966272  ;;  %s23_s20 = sadd.s32 1, %s1129_s20   ;;  %s1450_s18 = sld [smem:[#allocation13_spill]] }
 0x18a   : > { %p20_p4 = scmp.ge.s32.totalorder %s23_s20, 4   ;;  %s1451_s19 = sld [smem:[#allocation14_spill]] }
 0x18b   : > { %s1452_s15 = smov %s1113_s16  ;;  %s1453_s16 = smov %s1117_s17 }
 0x18c   : > { %s1454_s17 = smov %s1268_s7  ;;  %22 = sbr.rel (!%p20_p4) target bundleno = 10 (0xa), region = 103 }
 0x193   :  { %650 = vsyncpa [#allocation3], 1 }
 0x194   :  { %652 = vsyncpa [#allocation3 + $0x1], 1 }
 0x195   :  { %653 = vsyncpa [#allocation6], 1 }
 0x196   :  { %655 = vsyncpa [#allocation6 + $0x1], 1 }
 0x197   :  { %656 = vsyncpa [#allocation4], 1 }
 0x198   :  { %658 = vsyncpa [#allocation4 + $0x1], 1 }

</bundles_post_ra>
